<compile_context>
chip_gen: v5e
topology: v5e:2x2
jax: 0.10.0
libtpu: 0.0.40
codegen_flags: <defaults>
</compile_context>

<pallas_src>
from functools import partial

import jax
import jax.numpy as jnp
from jax.experimental import pallas as pl
from jax.experimental.pallas import tpu as pltpu


def _round_up(x, m):
    return (x + m - 1) // m * m


def q_mlp_kernel(sc_ref, sm_ref, ac_ref, am_ref, w_ref, b_ref, o_ref, *, ny, na):
    """One batch tile of the Q MLP, batch on the lane axis.

    sc_ref, sm_ref : (1, tile_b) int32  flat cat / mouse positions
    ac_ref, am_ref : (1, tile_b) int32  action indices in [0, Na)
    w_ref          : (4, 16, 16) f32 packed, PRE-TRANSPOSED weights
                       slab 0 = (W1 @ W2)^T  (cols 0:2+2Na real, rest zero)
                       slab 1 = W3^T, slab 2 = W4^T, slab 3 row 0 = W5^T
    b_ref          : (16, 4) f32 packed biases: cols = [b12, b3, b4, b5(pad)]
    o_ref          : (1, tile_b) f32  lane-dense output
    """
    hidden = w_ref.shape[1]
    tile_b = sc_ref.shape[1]

    # In-kernel grid-difference features (VPU).  Positions are small
    # non-negative integers, so floor((p + 0.5) / Ny) == p // Ny exactly even
    # if the multiply-by-reciprocal is a few ulp off (the +0.5 keeps the value
    # far from integer boundaries).
    sc = sc_ref[...].astype(jnp.float32)          # (1, tile_b)
    sm = sm_ref[...].astype(jnp.float32)
    inv_ny = 1.0 / ny
    sc_q = jnp.floor((sc + 0.5) * inv_ny)
    sm_q = jnp.floor((sm + 0.5) * inv_ny)
    dx = sc_q - sm_q                              # cat//Ny - mouse//Ny
    dy = (sc - ny * sc_q) - (sm - ny * sm_q)      # cat%Ny  - mouse%Ny

    # Assemble x^T = (16, tile_b): rows [dx, dy, onehot(a_cat), onehot(a_mouse), 0...]
    row = jax.lax.broadcasted_iota(jnp.int32, (hidden, tile_b), 0)
    ac_row = ac_ref[...] + 2                      # (1, tile_b) target row of a_cat one-hot
    am_row = am_ref[...] + 2 + na                 # (1, tile_b) target row of a_mouse one-hot
    x_t = (jnp.where(row == 0, dx, 0.0)
           + jnp.where(row == 1, dy, 0.0)
           + (row == ac_row).astype(jnp.float32)
           + (row == am_row).astype(jnp.float32))

    b = b_ref[...]                                # (16, 4)

    # Folded L2(L1(x)) (no activation between them in the PyTorch forward).
    h = jnp.dot(w_ref[0], x_t, preferred_element_type=jnp.float32) + b[:, 0:1]
    h = jnp.maximum(h, 0.0)                                                       # ReLU(L2(L1(x)))
    h = jnp.maximum(jnp.dot(w_ref[1], h, preferred_element_type=jnp.float32) + b[:, 1:2], 0.0)
    h = jnp.maximum(jnp.dot(w_ref[2], h, preferred_element_type=jnp.float32) + b[:, 2:3], 0.0)
    out = jnp.dot(w_ref[3], h, preferred_element_type=jnp.float32) + b[:, 3:4]    # only row 0 real
    o_ref[...] = out[0:1, :].astype(o_ref.dtype)


def pack_params(params, Na, hidden=16):
    """Fold L1 into L2 and pack all weights/biases, pre-transposed, into two slabs."""
    (w1, b1), (w2, b2), (w3, b3), (w4, b4), (w5, b5) = params
    in_dim = 2 + 2 * Na
    assert in_dim <= hidden
    w12 = w1 @ w2                        # (2 + 2*Na, hidden)
    b12 = b1 @ w2 + b2                   # (1, hidden)

    w_stack = jnp.zeros((4, hidden, hidden), jnp.float32)
    w_stack = w_stack.at[0, :, 0:in_dim].set(w12.T)    # (hidden, in_dim) into padded slab
    w_stack = w_stack.at[1].set(w3.T)
    w_stack = w_stack.at[2].set(w4.T)
    w_stack = w_stack.at[3, 0:1, :].set(w5.T)          # (1, hidden) into row 0

    b_stack = jnp.zeros((hidden, 4), jnp.float32)
    b_stack = b_stack.at[:, 0].set(b12[0])
    b_stack = b_stack.at[:, 1].set(b3[0])
    b_stack = b_stack.at[:, 2].set(b4[0])
    b_stack = b_stack.at[0, 3].set(b5[0, 0])
    return w_stack, b_stack


@partial(jax.jit, static_argnums=(6, 7))
def q_forward(s_cat, s_mouse, a_cat_idx, a_mouse_idx, w_stack, b_stack, Ny, Na):
    """s_cat/s_mouse: flat int positions (batch,). a_*_idx: int action indices (batch,)
    (one-hot callers can pass argmax of the one-hot). Returns (batch, 1) f32."""
    batch = s_cat.shape[0]

    MAX_TILE = 32768                     # ~0.5 MB of inputs per grid step
    batch_p = _round_up(batch, 128)      # lane-aligned
    if batch_p > MAX_TILE:
        tile_b = MAX_TILE
        batch_p = _round_up(batch_p, tile_b)
    elif batch_p >= 2048:
        # keep >= 2 grid steps so v7x's second TensorCore can be used
        tile_b = _round_up((batch_p + 1) // 2, 128)
        batch_p = 2 * tile_b
    else:
        tile_b = batch_p                 # single step for small batches

    def prep(t):
        t = t.astype(jnp.int32).reshape(-1)
        if batch_p != batch:
            t = jnp.pad(t, (0, batch_p - batch))
        return t.reshape(1, batch_p)     # batch on the lane axis

    sc, sm, ac, am = prep(s_cat), prep(s_mouse), prep(a_cat_idx), prep(a_mouse_idx)

    kernel = partial(q_mlp_kernel, ny=float(Ny), na=int(Na))

    out = pl.pallas_call(
        kernel,
        out_shape=jax.ShapeDtypeStruct((1, batch_p), jnp.float32),
        grid=(batch_p // tile_b,),
        in_specs=[
            pl.BlockSpec((1, tile_b), lambda i: (0, i)),
            pl.BlockSpec((1, tile_b), lambda i: (0, i)),
            pl.BlockSpec((1, tile_b), lambda i: (0, i)),
            pl.BlockSpec((1, tile_b), lambda i: (0, i)),
            # constant index maps -> weights/biases stay VMEM-resident across steps
            pl.BlockSpec(w_stack.shape, lambda i: (0, 0, 0)),
            pl.BlockSpec(b_stack.shape, lambda i: (0, 0)),
        ],
        out_specs=pl.BlockSpec((1, tile_b), lambda i: (0, i)),   # lane-dense output
        compiler_params=pltpu.CompilerParams(
            dimension_semantics=("parallel",)),
    )(sc, sm, ac, am, w_stack, b_stack)
    return out[0, :batch].reshape(batch, 1)


def init_params(key, in_dim, hidden=16):
    """Deterministic synthetic init (PyTorch-style uniform bounds).
    Weights stored as (in_features, out_features); biases as (1, out_features)."""
    dims = [(in_dim, hidden), (hidden, hidden), (hidden, hidden),
            (hidden, hidden), (hidden, 1)]
    params = []
    for fan_in, fan_out in dims:
        key, kw, kb = jax.random.split(key, 3)
        bound = 1.0 / jnp.sqrt(fan_in)
        w = jax.random.uniform(kw, (fan_in, fan_out), jnp.float32, -bound, bound)
        b = jax.random.uniform(kb, (1, fan_out), jnp.float32, -bound, bound)
        params.append((w, b))
    return params


if __name__ == "__main__":
    # Small env-consistent shapes: grid Nx x Ny, Na actions, batch of transitions.
    Nx, Ny, Na = 5, 5, 4
    batch = 8
    in_dim = 2 + 2 * Na

    key = jax.random.PRNGKey(0)
    k_params, k_sc, k_sm, k_ac, k_am = jax.random.split(key, 5)

    params = init_params(k_params, in_dim)
    w_stack, b_stack = pack_params(params, Na)

    # Positions are flat indices in [0, Nx*Ny); actions are indices in [0, Na).
    s_cat = jax.random.randint(k_sc, (batch,), 0, Nx * Ny)
    s_mouse = jax.random.randint(k_sm, (batch,), 0, Nx * Ny)
    a_cat_idx = jax.random.randint(k_ac, (batch,), 0, Na)
    a_mouse_idx = jax.random.randint(k_am, (batch,), 0, Na)

    out = q_forward(s_cat, s_mouse, a_cat_idx, a_mouse_idx, w_stack, b_stack, Ny, Na)
    out = jax.block_until_ready(out)

    # Pure-JAX reference of the SAME forward pass, using the original (unfolded) params
    # and the explicit one-hot action vectors exactly as the PyTorch module consumes them.
    def ref_forward():
        a_cat = jax.nn.one_hot(a_cat_idx, Na, dtype=jnp.float32)
        a_mouse = jax.nn.one_hot(a_mouse_idx, Na, dtype=jnp.float32)
        s = jnp.stack([s_cat // Ny - s_mouse // Ny,
                       s_cat % Ny - s_mouse % Ny], axis=1).astype(jnp.float32)
        x = jnp.concatenate([s, a_cat, a_mouse], axis=1)
        (w1, b1), (w2, b2), (w3, b3), (w4, b4), (w5, b5) = params
        h = x @ w1 + b1                       # no activation after linear1
        h = jnp.maximum(h @ w2 + b2, 0.0)
        h = jnp.maximum(h @ w3 + b3, 0.0)
        h = jnp.maximum(h @ w4 + b4, 0.0)
        return h @ w5 + b5

    ref = ref_forward()
    assert out.shape == (batch, 1)
    assert jnp.allclose(out, ref, atol=1e-4, rtol=1e-4), (out, ref)
    print("KERNEL_OK")
</pallas_src>

<mosaic_0001>
module attributes {stable_mosaic.version = 11 : i64} {
  func.func @q_mlp_kernel(%arg0: i32, %arg1: memref<1x128xi32, #tpu.memory_space<vmem>>, %arg2: memref<1x128xi32, #tpu.memory_space<vmem>>, %arg3: memref<1x128xi32, #tpu.memory_space<vmem>>, %arg4: memref<1x128xi32, #tpu.memory_space<vmem>>, %arg5: memref<4x16x16xf32, #tpu.memory_space<vmem>>, %arg6: memref<16x4xf32, #tpu.memory_space<vmem>>, %arg7: memref<1x128xf32, #tpu.memory_space<vmem>>) attributes {dimension_semantics = [#tpu.dimension_semantics<parallel>], iteration_bounds = array<i64: 1>, scalar_prefetch = 0 : i64, scratch_operands = 0 : i64, tpu.core_type = #tpu.core_type<tc>, window_params = [{transform_indices = @transform_0, window_bounds = array<i64: 1, 128>}, {transform_indices = @transform_1, window_bounds = array<i64: 1, 128>}, {transform_indices = @transform_2, window_bounds = array<i64: 1, 128>}, {transform_indices = @transform_3, window_bounds = array<i64: 1, 128>}, {pipeline_mode = #tpu.pipeline_mode<synchronous>, transform_indices = @transform_4, window_bounds = array<i64: 4, 16, 16>}, {pipeline_mode = #tpu.pipeline_mode<synchronous>, transform_indices = @transform_5, window_bounds = array<i64: 16, 4>}, {transform_indices = @transform_6, window_bounds = array<i64: 1, 128>}]} {
    %c0 = arith.constant 0 : index
    %c0_0 = arith.constant 0 : index
    %0 = vector.load %arg1[%c0, %c0_0] : memref<1x128xi32, #tpu.memory_space<vmem>>, vector<1x128xi32>
    %1 = arith.sitofp %0 : vector<1x128xi32> to vector<1x128xf32>
    %c0_1 = arith.constant 0 : index
    %c0_2 = arith.constant 0 : index
    %2 = vector.load %arg2[%c0_1, %c0_2] : memref<1x128xi32, #tpu.memory_space<vmem>>, vector<1x128xi32>
    %3 = arith.sitofp %2 : vector<1x128xi32> to vector<1x128xf32>
    %cst = arith.constant 5.000000e-01 : f32
    %4 = vector.broadcast %cst : f32 to vector<1x128xf32>
    %5 = arith.addf %1, %4 : vector<1x128xf32>
    %cst_3 = arith.constant 2.000000e-01 : f32
    %6 = vector.broadcast %cst_3 : f32 to vector<1x128xf32>
    %7 = arith.mulf %5, %6 : vector<1x128xf32>
    %8 = math.floor %7 : vector<1x128xf32>
    %cst_4 = arith.constant 5.000000e-01 : f32
    %9 = vector.broadcast %cst_4 : f32 to vector<1x128xf32>
    %10 = arith.addf %3, %9 : vector<1x128xf32>
    %cst_5 = arith.constant 2.000000e-01 : f32
    %11 = vector.broadcast %cst_5 : f32 to vector<1x128xf32>
    %12 = arith.mulf %10, %11 : vector<1x128xf32>
    %13 = math.floor %12 : vector<1x128xf32>
    %14 = arith.subf %8, %13 : vector<1x128xf32>
    %cst_6 = arith.constant 5.000000e+00 : f32
    %15 = vector.broadcast %cst_6 : f32 to vector<1x128xf32>
    %16 = arith.mulf %15, %8 : vector<1x128xf32>
    %17 = arith.subf %1, %16 : vector<1x128xf32>
    %cst_7 = arith.constant 5.000000e+00 : f32
    %18 = vector.broadcast %cst_7 : f32 to vector<1x128xf32>
    %19 = arith.mulf %18, %13 : vector<1x128xf32>
    %20 = arith.subf %3, %19 : vector<1x128xf32>
    %21 = arith.subf %17, %20 : vector<1x128xf32>
    %22 = tpu.iota {dimensions = array<i32: 0>} : vector<16x128xi32>
    %c0_8 = arith.constant 0 : index
    %c0_9 = arith.constant 0 : index
    %23 = vector.load %arg3[%c0_8, %c0_9] : memref<1x128xi32, #tpu.memory_space<vmem>>, vector<1x128xi32>
    %c2_i32 = arith.constant 2 : i32
    %24 = vector.broadcast %c2_i32 : i32 to vector<1x128xi32>
    %25 = arith.addi %23, %24 : vector<1x128xi32>
    %c0_10 = arith.constant 0 : index
    %c0_11 = arith.constant 0 : index
    %26 = vector.load %arg4[%c0_10, %c0_11] : memref<1x128xi32, #tpu.memory_space<vmem>>, vector<1x128xi32>
    %c2_i32_12 = arith.constant 2 : i32
    %27 = vector.broadcast %c2_i32_12 : i32 to vector<1x128xi32>
    %28 = arith.addi %26, %27 : vector<1x128xi32>
    %c4_i32 = arith.constant 4 : i32
    %29 = vector.broadcast %c4_i32 : i32 to vector<1x128xi32>
    %30 = arith.addi %28, %29 : vector<1x128xi32>
    %c0_i32 = arith.constant 0 : i32
    %31 = vector.broadcast %c0_i32 : i32 to vector<16x128xi32>
    %32 = arith.cmpi eq, %22, %31 : vector<16x128xi32>
    %cst_13 = arith.constant 0.000000e+00 : f32
    %33 = vector.shape_cast %14 : vector<1x128xf32> to vector<1x128xf32>
    %34 = vector.broadcast %33 : vector<1x128xf32> to vector<16x128xf32>
    %35 = vector.broadcast %cst_13 : f32 to vector<16x128xf32>
    %36 = arith.select %32, %34, %35 : vector<16x128xi1>, vector<16x128xf32>
    %c1_i32 = arith.constant 1 : i32
    %37 = vector.broadcast %c1_i32 : i32 to vector<16x128xi32>
    %38 = arith.cmpi eq, %22, %37 : vector<16x128xi32>
    %cst_14 = arith.constant 0.000000e+00 : f32
    %39 = vector.shape_cast %21 : vector<1x128xf32> to vector<1x128xf32>
    %40 = vector.broadcast %39 : vector<1x128xf32> to vector<16x128xf32>
    %41 = vector.broadcast %cst_14 : f32 to vector<16x128xf32>
    %42 = arith.select %38, %40, %41 : vector<16x128xi1>, vector<16x128xf32>
    %43 = arith.addf %36, %42 : vector<16x128xf32>
    %44 = vector.broadcast %25 : vector<1x128xi32> to vector<16x128xi32>
    %45 = arith.cmpi eq, %22, %44 : vector<16x128xi32>
    %46 = arith.extui %45 : vector<16x128xi1> to vector<16x128xi32>
    %47 = arith.sitofp %46 : vector<16x128xi32> to vector<16x128xf32>
    %48 = arith.addf %43, %47 : vector<16x128xf32>
    %49 = vector.broadcast %30 : vector<1x128xi32> to vector<16x128xi32>
    %50 = arith.cmpi eq, %22, %49 : vector<16x128xi32>
    %51 = arith.extui %50 : vector<16x128xi1> to vector<16x128xi32>
    %52 = arith.sitofp %51 : vector<16x128xi32> to vector<16x128xf32>
    %53 = arith.addf %48, %52 : vector<16x128xf32>
    %c0_15 = arith.constant 0 : index
    %c0_16 = arith.constant 0 : index
    %54 = vector.load %arg6[%c0_15, %c0_16] : memref<16x4xf32, #tpu.memory_space<vmem>>, vector<16x4xf32>
    %c0_17 = arith.constant 0 : index
    %c0_18 = arith.constant 0 : index
    %c0_19 = arith.constant 0 : index
    %55 = vector.load %arg5[%c0_17, %c0_18, %c0_19] : memref<4x16x16xf32, #tpu.memory_space<vmem>>, vector<1x16x16xf32>
    %56 = vector.shape_cast %55 : vector<1x16x16xf32> to vector<16x16xf32>
    %cst_20 = arith.constant dense<0.000000e+00> : vector<16x128xf32>
    %57 = tpu.matmul %56, %53, %cst_20 {dimension_numbers = #tpu.dot_dimension_numbers<[1], [0], [0], [1], [0, 0, 1, 1], [], []>} : vector<16x16xf32>, vector<16x128xf32>, vector<16x128xf32> -> vector<16x128xf32>
    %58 = vector.extract_strided_slice %54 {offsets = [0, 0], sizes = [16, 1], strides = [1, 1]} : vector<16x4xf32> to vector<16x1xf32>
    %59 = vector.broadcast %58 : vector<16x1xf32> to vector<16x128xf32>
    %60 = arith.addf %57, %59 : vector<16x128xf32>
    %cst_21 = arith.constant 0.000000e+00 : f32
    %61 = vector.broadcast %cst_21 : f32 to vector<16x128xf32>
    %62 = arith.maximumf %60, %61 : vector<16x128xf32>
    %c1 = arith.constant 1 : index
    %c0_22 = arith.constant 0 : index
    %c0_23 = arith.constant 0 : index
    %63 = vector.load %arg5[%c1, %c0_22, %c0_23] : memref<4x16x16xf32, #tpu.memory_space<vmem>>, vector<1x16x16xf32>
    %64 = vector.shape_cast %63 : vector<1x16x16xf32> to vector<16x16xf32>
    %cst_24 = arith.constant dense<0.000000e+00> : vector<16x128xf32>
    %65 = tpu.matmul %64, %62, %cst_24 {dimension_numbers = #tpu.dot_dimension_numbers<[1], [0], [0], [1], [0, 0, 1, 1], [], []>} : vector<16x16xf32>, vector<16x128xf32>, vector<16x128xf32> -> vector<16x128xf32>
    %66 = vector.extract_strided_slice %54 {offsets = [0, 1], sizes = [16, 1], strides = [1, 1]} : vector<16x4xf32> to vector<16x1xf32>
    %67 = vector.broadcast %66 : vector<16x1xf32> to vector<16x128xf32>
    %68 = arith.addf %65, %67 : vector<16x128xf32>
    %cst_25 = arith.constant 0.000000e+00 : f32
    %69 = vector.broadcast %cst_25 : f32 to vector<16x128xf32>
    %70 = arith.maximumf %68, %69 : vector<16x128xf32>
    %c2 = arith.constant 2 : index
    %c0_26 = arith.constant 0 : index
    %c0_27 = arith.constant 0 : index
    %71 = vector.load %arg5[%c2, %c0_26, %c0_27] : memref<4x16x16xf32, #tpu.memory_space<vmem>>, vector<1x16x16xf32>
    %72 = vector.shape_cast %71 : vector<1x16x16xf32> to vector<16x16xf32>
    %cst_28 = arith.constant dense<0.000000e+00> : vector<16x128xf32>
    %73 = tpu.matmul %72, %70, %cst_28 {dimension_numbers = #tpu.dot_dimension_numbers<[1], [0], [0], [1], [0, 0, 1, 1], [], []>} : vector<16x16xf32>, vector<16x128xf32>, vector<16x128xf32> -> vector<16x128xf32>
    %74 = vector.extract_strided_slice %54 {offsets = [0, 2], sizes = [16, 1], strides = [1, 1]} : vector<16x4xf32> to vector<16x1xf32>
    %75 = vector.broadcast %74 : vector<16x1xf32> to vector<16x128xf32>
    %76 = arith.addf %73, %75 : vector<16x128xf32>
    %cst_29 = arith.constant 0.000000e+00 : f32
    %77 = vector.broadcast %cst_29 : f32 to vector<16x128xf32>
    %78 = arith.maximumf %76, %77 : vector<16x128xf32>
    %c3 = arith.constant 3 : index
    %c0_30 = arith.constant 0 : index
    %c0_31 = arith.constant 0 : index
    %79 = vector.load %arg5[%c3, %c0_30, %c0_31] : memref<4x16x16xf32, #tpu.memory_space<vmem>>, vector<1x16x16xf32>
    %80 = vector.shape_cast %79 : vector<1x16x16xf32> to vector<16x16xf32>
    %cst_32 = arith.constant dense<0.000000e+00> : vector<16x128xf32>
    %81 = tpu.matmul %80, %78, %cst_32 {dimension_numbers = #tpu.dot_dimension_numbers<[1], [0], [0], [1], [0, 0, 1, 1], [], []>} : vector<16x16xf32>, vector<16x128xf32>, vector<16x128xf32> -> vector<16x128xf32>
    %82 = vector.extract_strided_slice %54 {offsets = [0, 3], sizes = [16, 1], strides = [1, 1]} : vector<16x4xf32> to vector<16x1xf32>
    %83 = vector.broadcast %82 : vector<16x1xf32> to vector<16x128xf32>
    %84 = arith.addf %81, %83 : vector<16x128xf32>
    %85 = vector.extract_strided_slice %84 {offsets = [0, 0], sizes = [1, 128], strides = [1, 1]} : vector<16x128xf32> to vector<1x128xf32>
    %c0_33 = arith.constant 0 : index
    %c0_34 = arith.constant 0 : index
    %86 = vector.load %arg7[%c0_33, %c0_34] : memref<1x128xf32, #tpu.memory_space<vmem>>, vector<1x128xf32>
    tpu.vector_store %arg7[%c0_33, %c0_34], %85 {strides = array<i32>} : memref<1x128xf32, #tpu.memory_space<vmem>>, vector<1x128xf32>,
    return
  }
  func.func @transform_0(%arg0: i32) -> (i32, i32) {
    %c0_i32 = arith.constant 0 : i32
    %c0_i32_0 = arith.constant 0 : i32
    return %c0_i32, %arg0 : i32, i32
  }
  func.func @transform_1(%arg0: i32) -> (i32, i32) {
    %c0_i32 = arith.constant 0 : i32
    %c0_i32_0 = arith.constant 0 : i32
    return %c0_i32, %arg0 : i32, i32
  }
  func.func @transform_2(%arg0: i32) -> (i32, i32) {
    %c0_i32 = arith.constant 0 : i32
    %c0_i32_0 = arith.constant 0 : i32
    return %c0_i32, %arg0 : i32, i32
  }
  func.func @transform_3(%arg0: i32) -> (i32, i32) {
    %c0_i32 = arith.constant 0 : i32
    %c0_i32_0 = arith.constant 0 : i32
    return %c0_i32, %arg0 : i32, i32
  }
  func.func @transform_4(%arg0: i32) -> (i32, i32, i32) {
    %c0_i32 = arith.constant 0 : i32
    %c0_i32_0 = arith.constant 0 : i32
    %c0_i32_1 = arith.constant 0 : i32
    %c0_i32_2 = arith.constant 0 : i32
    return %c0_i32, %c0_i32_0, %c0_i32_1 : i32, i32, i32
  }
  func.func @transform_5(%arg0: i32) -> (i32, i32) {
    %c0_i32 = arith.constant 0 : i32
    %c0_i32_0 = arith.constant 0 : i32
    %c0_i32_1 = arith.constant 0 : i32
    return %c0_i32, %c0_i32_0 : i32, i32
  }
  func.func @transform_6(%arg0: i32) -> (i32, i32) {
    %c0_i32 = arith.constant 0 : i32
    %c0_i32_0 = arith.constant 0 : i32
    return %c0_i32, %arg0 : i32, i32
  }
}

</mosaic_0001>

<bundles_post_ra>
// kernel: q_forward.1
= control target key start
LH: loop header
LB: loop body
LE: loop exit
PB: predicated region body
PF: predicated region fallthrough
CT: control target
= control target key end

     0   :  { %11 = vsyncpa [#allocation3], 0  ;;  %s321_s24 = smov [#allocation2]   ;;  %s322_s26 = smov 128   ;;  %s407_s0 = inlined_call_operand.vmem [shape: s32[1,128], index: 0, kind: input, shape index: {}]   ;;  %s408_s1 = inlined_call_operand.vmem [shape: s32[1,128], index: 1, kind: input, shape index: {}]   ;;  %s409_s2 = inlined_call_operand.vmem [shape: s32[1,128], index: 2, kind: input, shape index: {}]   ;;  %s410_s3 = inlined_call_operand.vmem [shape: s32[1,128], index: 3, kind: input, shape index: {}]   ;;  %s411_s4 = inlined_call_operand.hbm [shape: f32[4,16,16], index: 4, kind: input, shape index: {}]   ;;  %s412_s5 = inlined_call_operand.vmem [shape: f32[16,4], index: 5, kind: input, shape index: {}]   ;;  %s413_s6 = inlined_call_operand.vmem [shape: f32[1,128], index: 6, kind: output, shape index: {}]  }
   0x1   :  { %s24_s23 = sshll.u32 %s411_s4, 4  ;;  %s26_s25 = sshll.u32 %s321_s24, 4  ;;  %s25_s23 = int_to_ptr.hbm [resolvable:$true] %s24_s23  ;;  %s27_s25 = int_to_ptr.vmem [resolvable:$true] %s26_s25 }
   0x2   :  { %s323_s27 = smov 8  }
   0x3   :  { %32 = dma.hbm_to_vmem [thread:$0]  %s25_s23, 1024, %s27_s25, [#allocation3], %s322_s26, %s322_s26, %s323_s27  }
   0x4   :  { %319 = dma.done.wait [#allocation3], 1024  }
   0x5   :  { %320 = vsyncadd [#allocation3], 4294966272  ;;  %v55_v0 = vlaneseq  ;;  %v324_v1 = vmov 0   ;;  %v58_v3 = vld [vmem:[%s409_s2] sm:$0x1]  ;;  %v382_v11 = vld [vmem:[%s412_s5 + $0x8] sm:$0xff] }
   0x6   :  { %291 = vset.pattern.permute.xlu0 %v324_v1  ;;  %v60_v4 = vld [vmem:[%s410_s3] sm:$0x1]  ;;  %v59_v7 = vadd.s32 2, %v58_v3  ;;  %v325_v19 = vmov 0.0   ;;  %vm111_vm6 = vcmask 130048   ;;  %v100_v43 = vld [vmem:[#allocation2 + $0x8] sm:$0xff] }
   0x7   :  { %v56_v2 = vshrl.u32 %v55_v0, 7  ;;  %v39_v5 = vld [vmem:[%s407_s0] sm:$0x1]  ;;  %v61_v8 = vadd.s32 2, %v60_v4  ;;  %108 = vperm.xlu0 %291, %v382_v11   ;;  %v326_v44 = vmov 1   ;;  %v144_v53 = vld [vmem:[#allocation2 + $0x10] sm:$0xff] }
   0x8   :  { %v40_v9 = vcvt.s32.f32 %v39_v5  ;;  %v41_v10 = vld [vmem:[%s408_s1] sm:$0x1]  ;;  %v79_v14 = vperm.slane %v59_v7, 0  ;;  %292 = vset.pattern.permute.xlu1 %v326_v44  ;;  %v145_v54 = vld [vmem:[#allocation2 + $0x18] sm:$0xff]  ;;  %v327_v55 = vmov 2   ;;  %v187_v1 = vld [vmem:[#allocation2 + $0x28] sm:$0xff] }
   0x9   :  { %v57_v6 = vadd.s32 8, %v56_v2  ;;  %v42_v12 = vcvt.s32.f32 %v41_v10  ;;  %v62_v13 = vadd.s32 4, %v61_v8  ;;  %v388_v23 = vld [vmem:[%s412_s5] sm:$0xff]  ;;  %vm63_vm2 = vcmp.eq.s32.totalorder %v56_v2, 0  ;;  %151 = vperm.xlu1 %292, %v382_v11   ;;  %293 = vset.pattern.permute.xlu2 %v327_v55 }
   0xa   :  { %v43_v15 = vadd.f32 0.5, %v40_v9  ;;  %vm70_vm3 = vcmp.eq.s32.totalorder %v56_v2, 1  ;;  %vm80_vm4 = vcmp.eq.s32.totalorder %v56_v2, %v79_v14  ;;  %v99_v42 = vld [vmem:[#allocation2] sm:$0xff]  ;;  %193 = vperm.xlu2 %293, %v382_v11   ;;  %v228_v11 = vld [vmem:[#allocation2 + $0x30] sm:$0xff] }
   0xb   :  { %v46_v16 = vadd.f32 0.5, %v42_v12  ;;  %vm81_vm0 = vcmp.eq.s32.totalorder %v57_v6, %v79_v14  ;;  %v88_v17 = vperm.slane %v62_v13, 0  ;;  %v271_v37 = vsel %vm80_vm4, 1.0, %v325_v19  ;;  %v186_v0 = vld [vmem:[#allocation2 + $0x20] sm:$0xff] }
   0xc   :  { %v44_v18 = vmul.f32 0.2, %v43_v15  ;;  %v272_v20 = vsel %vm81_vm0, 1.0, %v325_v19 }
   0xd   :  { %v47_v21 = vmul.f32 0.2, %v46_v16  ;;  %vm90_vm1 = vcmp.eq.s32.totalorder %v57_v6, %v88_v17  ;;  %vm89_vm5 = vcmp.eq.s32.totalorder %v56_v2, %v88_v17  ;;  %v328_v2 = vmov 3  }
   0xe   :  { %v45_v22 = vfloor.f32 %v44_v18  ;;  %v274_v24 = vsel %vm90_vm1, 1.0, %v325_v19  ;;  %v273_v39 = vsel %vm89_vm5, 1.0, %v325_v19 }
   0xf   :  { %v48_v25 = vfloor.f32 %v47_v21  ;;  %v96_v26 = vadd.f32 %v274_v24, %v272_v20  ;;  %103 = vperm.xlu0 %291, %v388_v23  }
  0x10   :  { %v50_v27 = vmul.f32 5.0, %v45_v22 }
  0x11   :  { %v49_v28 = vsub.f32 %v45_v22, %v48_v25  ;;  %v52_v29 = vmul.f32 5.0, %v48_v25  ;;  %132 = vmatpush.msra.mxu0 %v96_v26  ;;  %147 = vperm.xlu1 %292, %v388_v23  }
  0x12   :  { %v51_v30 = vsub.f32 %v40_v9, %v50_v27  ;;  %189 = vperm.xlu2 %293, %v388_v23  }
  0x13   :  { %v53_v31 = vsub.f32 %v42_v12, %v52_v29  ;;  %v66_v32 = vperm.slane %v49_v28, 0  ;;  %v229_v12 = vld [vmem:[#allocation2 + $0x38] sm:$0xff] }
  0x15   :  { %v54_v33 = vsub.f32 %v51_v30, %v53_v31  ;;  %v68_v34 = vsel %vm63_vm2, %v66_v32, 0.0 }
  0x17   :  { %v73_v35 = vperm.slane %v54_v33, 0  ;;  %294 = vset.pattern.permute.xlu0 %v328_v2 }
  0x18   :  { %231 = vperm.xlu0 %294, %v388_v23  }
  0x19   :  { %v75_v36 = vsel %vm70_vm3, %v73_v35, 0.0 }
  0x1a   :  { %v77_v38 = vadd.f32 %v75_v36, %v68_v34 }
  0x1c   :  { %v86_v40 = vadd.f32 %v271_v37, %v77_v38 }
  0x1e   :  { %v95_v41 = vadd.f32 %v273_v39, %v86_v40 }
  0x20   :  { %133 = vmatpush.msra.mxu0 %v95_v41 }
  0x21   :  { %275 = vmatmul.msk.f32.vlgmr.msra.gmra.mxu0 %vm111_vm6, %v99_v42 }
  0x29   :  { %276 = vmatmul.msk.f32.gmra.mxu0 %vm111_vm6, %v100_v43 }
  0x64   :  { %v194_v3 = vpop.permute.xlu2 %193 }
  0x6c   :  { %v190_v5 = vpop.permute.xlu2 %189 }
  0x79   :  { %v109_v45 = vpop.permute.xlu0 %108 }
  0x7b   :  { %v152_v56 = vpop.permute.xlu1 %151 }
  0x81   :  { %v104_v47 = vpop.permute.xlu0 %103 }
  0x83   :  { %v148_v58 = vpop.permute.xlu1 %147 }
  0x8a   :  { %v232_v13 = vpop.permute.xlu0 %231 }
  0x9e   :  { %v135_v46 = vpop.f32.mrf.mxu0 }
  0x9f   :  { %v136_v49 = vadd.f32 %v135_v46, %v104_v47 }
  0xa1   :  { %v141_v52 = vmax.f32 %v136_v49, 0.0 }
  0xa6   :  { %v138_v48 = vpop.f32.mrf.mxu0 }
  0xa7   :  { %v139_v50 = vadd.f32 %v138_v48, %v109_v45 }
  0xa9   :  { %v142_v51 = vmax.f32 %v139_v50, 0.0 }
  0xab   :  { %174 = vmatpush.msra.mxu1 %v142_v51 }
  0xad   :  { %175 = vmatpush.msra.mxu1 %v141_v52 }
  0xae   :  { %277 = vmatmul.msk.f32.vlgmr.msra.gmra.mxu1 %vm111_vm6, %v144_v53 }
  0xb6   :  { %278 = vmatmul.msk.f32.gmra.mxu1 %vm111_vm6, %v145_v54 }
 0x12b   :  { %v177_v57 = vpop.f32.mrf.mxu1 }
 0x12c   :  { %v178_v60 = vadd.f32 %v177_v57, %v148_v58 }
 0x12e   :  { %v183_v63 = vmax.f32 %v178_v60, 0.0 }
 0x133   :  { %v180_v59 = vpop.f32.mrf.mxu1 }
 0x134   :  { %v181_v61 = vadd.f32 %v180_v59, %v152_v56 }
 0x136   :  { %v184_v62 = vmax.f32 %v181_v61, 0.0 }
 0x138   :  { %216 = vmatpush.msra.mxu2 %v184_v62 }
 0x13a   :  { %217 = vmatpush.msra.mxu2 %v183_v63 }
 0x13b   :  { %279 = vmatmul.msk.f32.vlgmr.msra.gmra.mxu2 %vm111_vm6, %v186_v0 }
 0x143   :  { %280 = vmatmul.msk.f32.gmra.mxu2 %vm111_vm6, %v187_v1 }
 0x1be   :  { %v219_v4 = vpop.f32.mrf.mxu2 }
 0x1bf   :  { %v220_v7 = vadd.f32 %v219_v4, %v190_v5 }
 0x1c1   :  { %v225_v10 = vmax.f32 %v220_v7, 0.0 }
 0x1c6   :  { %v222_v6 = vpop.f32.mrf.mxu2 }
 0x1c7   :  { %v223_v8 = vadd.f32 %v222_v6, %v194_v3 }
 0x1c9   :  { %v226_v9 = vmax.f32 %v223_v8, 0.0 }
 0x1cb   :  { %257 = vmatpush.msra.mxu3 %v226_v9 }
 0x1cd   :  { %258 = vmatpush.msra.mxu3 %v225_v10 }
 0x1ce   :  { %281 = vmatmul.msk.f32.vlgmr.msra.gmra.mxu3 %vm111_vm6, %v228_v11 }
 0x1d6   :  { %282 = vmatmul.msk.f32.gmra.mxu3 %vm111_vm6, %v229_v12 }
 0x251   :  { %v260_v14 = vpop.f32.mrf.mxu3 }
 0x252   :  { %v261_v15 = vadd.f32 %v260_v14, %v232_v13 }
 0x254   :  { %265 = vst [vmem:[%s413_s6] sm:$0x1] %v261_v15 }
 0x259   :  { %v263_v16 = vpop.f32.mrf.mxu3 }
 0x25a   :  { %270 = vsyncpa [#allocation3], 1 }

</bundles_post_ra>
